<compile_context>
chip_gen: v7x
topology: tpu7x:2x2x1
jax: 0.10.0
libtpu: 0.0.40
codegen_flags: <defaults>
</compile_context>

<pallas_src>
import math
import functools

import jax
import jax.numpy as jnp
from jax.experimental import pallas as pl
from jax.experimental.pallas import tpu as pltpu


def _cheb_block_kernel(t_ref, a_ref, *rest, use_bias):
    """One block of TB (batch*time) slices, N-major layout.

    t_ref:    (N, Ks*N)        bf16, resident: [T_0(L) | ... | T_{Ks-1}(L)]
    a_ref:    (Ks*N, TB*c_out) bf16, streamed: rows (k, node), cols (bt, c_out)
    bias_ref: (1, TB*c_out)    f32, resident (only when use_bias)
    o_ref:    (N, TB*c_out)    f32
    """
    if use_bias:
        bias_ref, o_ref = rest
    else:
        (o_ref,) = rest

    # Single dense MXU matmul per block: bf16 operands, f32 accumulation.
    acc = jnp.dot(t_ref[...], a_ref[...], preferred_element_type=jnp.float32)
    if use_bias:
        acc = acc + bias_ref[...]          # (1, TB*c_out) broadcasts over N
    o_ref[...] = acc.astype(o_ref.dtype)


def _cheb_basis(gso, Ks):
    """[T_0(L) | T_1(L) | ... | T_{Ks-1}(L)] of shape (N, Ks*N), float32."""
    N = gso.shape[0]
    gso = gso.astype(jnp.float32)
    mats = [jnp.eye(N, dtype=jnp.float32)]
    if Ks >= 2:
        mats.append(gso)
        for _ in range(2, Ks):
            mats.append(2.0 * (gso @ mats[-1]) - mats[-2])
    return jnp.concatenate(mats, axis=1)


def _vmem_budget_bytes():
    """~Half of physical VMEM; conservative v7x (64 MiB) assumption if unknown."""
    try:
        cap = pltpu.get_tpu_info().vmem_capacity_bytes
    except Exception:
        cap = 64 << 20
    return max(cap // 2, 16 << 20)


def _block_vmem_bytes(tb, c_out, Ks, N):
    lanes = tb * c_out
    return (2 * Ks * N * lanes * 2      # A block, bf16, double-buffered
            + 2 * N * lanes * 4         # out block, f32, double-buffered
            + 2 * N * Ks * N * 2        # resident Chebyshev basis (2 copies)
            + 2 * lanes * 4)            # bias tile


def _pick_tb(bt, c_out, Ks, N, target_lanes=512):
    """TB such that TB*c_out is a multiple of 128 (lane-dense stores), the
    double-buffered block footprint fits ~half of VMEM, and (when possible)
    the grid has >= 2 steps so the parallel axis shards across TensorCores."""
    unit = 128 // math.gcd(128, c_out)            # smallest lane-dense TB
    budget = _vmem_budget_bytes()

    tb = max(unit, (target_lanes // (unit * c_out)) * unit)
    while tb > unit and _block_vmem_bytes(tb, c_out, Ks, N) > budget:
        tb -= unit
    # prefer >= 2 grid steps (megacore / v7x dual-TC sharding)
    while tb > unit and -(-bt // tb) < 2:
        tb -= unit
    # prefer a TB that divides bt exactly (no padding) when one is in range
    for cand in range(tb, unit - 1, -unit):
        if bt % cand == 0:
            return cand
    return tb


def cheb_graph_conv(x, gso, weight, bias):
    """x: (B, c_in, T, N) float32 (PyTorch NCHW convention).

    Returns (B, T, N, c_out), matching ChebGraphConv.forward.
    """
    B, c_in, T, N = x.shape
    Ks, _, c_out = weight.shape
    if Ks < 1:
        raise ValueError(f"Ks must be a positive integer, got {Ks}.")
    use_bias = bias is not None
    BT = B * T

    TB = _pick_tb(BT, c_out, Ks, N)
    n_blk = -(-BT // TB)
    BTp = n_blk * TB

    # x-independent Chebyshev basis: built once, resident in VMEM (bf16 operand).
    tmat = _cheb_basis(gso, Ks).astype(jnp.bfloat16)            # (N, Ks*N)

    # Fused channel mixing + N-major relayout (one XLA einsum, tiny contraction):
    #   A[k, n, bt, j] = sum_i x[b, i, t, n] * W[k, i, j]   (bt = b*T + t)
    a = jnp.einsum("bitn,kij->knbtj", x.astype(jnp.float32),
                   weight.astype(jnp.float32))
    a = a.reshape(Ks, N, BT, c_out)
    if BTp != BT:
        a = jnp.pad(a, ((0, 0), (0, 0), (0, BTp - BT), (0, 0)))
    a = a.reshape(Ks * N, BTp * c_out).astype(jnp.bfloat16)

    in_specs = [
        pl.BlockSpec((N, Ks * N), lambda i: (0, 0)),            # Tmat (resident)
        pl.BlockSpec((Ks * N, TB * c_out), lambda i: (0, i)),   # A   (streamed)
    ]
    args = [tmat, a]
    if use_bias:
        bias_tile = jnp.tile(bias.astype(jnp.float32), TB).reshape(1, TB * c_out)
        in_specs.append(pl.BlockSpec((1, TB * c_out), lambda i: (0, 0)))
        args.append(bias_tile)

    kernel = functools.partial(_cheb_block_kernel, use_bias=use_bias)

    vmem_need = _block_vmem_bytes(TB, c_out, Ks, N)
    vmem_limit = int(min(max(2 * vmem_need + (4 << 20), 16 << 20), 100 << 20))

    out_t = pl.pallas_call(
        kernel,
        out_shape=jax.ShapeDtypeStruct((N, BTp * c_out), x.dtype),
        grid_spec=pltpu.PrefetchScalarGridSpec(
            num_scalar_prefetch=0,
            grid=(n_blk,),
            in_specs=in_specs,
            out_specs=pl.BlockSpec((N, TB * c_out), lambda i: (0, i)),
        ),
        compiler_params=pltpu.CompilerParams(
            dimension_semantics=("parallel",),
            vmem_limit_bytes=vmem_limit),
    )(*args)

    # (N, BTp*c_out) -> (B, T, N, c_out)
    out_t = out_t.reshape(N, BTp, c_out)[:, :BT]
    # TODO(synk): emit the (N, B, T, c_out) layout directly to the consumer to
    #             drop this final HBM round-trip transpose for small N.
    return jnp.transpose(out_t.reshape(N, B, T, c_out), (1, 2, 0, 3))


def init_params(key, c_in, c_out, Ks, use_bias=True):
    """Deterministic init mirroring the module's reset_parameters shapes."""
    kw, kb = jax.random.split(key)
    # kaiming_uniform_(a=sqrt(5)) on tensor (Ks, c_in, c_out):
    # fan_in = size(1) * prod(size(2:)) = c_in * c_out
    fan_in = c_in * c_out
    gain = math.sqrt(2.0 / (1.0 + 5.0))          # a = sqrt(5)
    bound_w = gain * math.sqrt(3.0 / fan_in)
    weight = jax.random.uniform(kw, (Ks, c_in, c_out), jnp.float32,
                                -bound_w, bound_w)
    bias = None
    if use_bias:
        bound_b = 1.0 / math.sqrt(fan_in)
        bias = jax.random.uniform(kb, (c_out,), jnp.float32,
                                  -bound_b, bound_b)
    return weight, bias


def _reference(x, gso, weight, bias):
    """Pure-JAX (f32) mirror of the PyTorch forward, for the sanity check."""
    Ks = weight.shape[0]
    xp = jnp.transpose(x, (0, 2, 3, 1))          # (B, T, N, c_in)
    x_list = [xp]
    if Ks >= 2:
        x_list.append(jnp.einsum('hi,btij->bthj', gso, xp))
        for k in range(2, Ks):
            x_list.append(jnp.einsum('hi,btij->bthj', 2 * gso, x_list[k - 1])
                          - x_list[k - 2])
    xs = jnp.stack(x_list, axis=2)               # (B, T, Ks, N, c_in)
    out = jnp.einsum('btkhi,kij->bthj', xs, weight)
    if bias is not None:
        out = out + bias
    return out


if __name__ == "__main__":
    B, c_in, T, N = 2, 4, 64, 16
    c_out, Ks = 8, 3

    key = jax.random.PRNGKey(0)
    kx, kg, kp = jax.random.split(key, 3)

    x = jax.random.normal(kx, (B, c_in, T, N), jnp.float32)
    # symmetric-normalized-ish random graph shift operator (N, N)
    gso = jax.random.normal(kg, (N, N), jnp.float32) / math.sqrt(N)
    gso = 0.5 * (gso + gso.T)

    weight, bias = init_params(kp, c_in, c_out, Ks, use_bias=True)

    out = cheb_graph_conv(x, gso, weight, bias)
    jax.block_until_ready(out)
    ref = _reference(x, gso, weight, bias)
    assert out.shape == (B, T, N, c_out)
    # bf16 MXU operands with f32 accumulation -> tolerance relaxed vs pure f32
    assert jnp.allclose(out, ref, atol=3e-2, rtol=3e-2)

    # no-bias path (bias input is dropped from the kernel entirely)
    out_nb = cheb_graph_conv(x, gso, weight, None)
    jax.block_until_ready(out_nb)
    ref_nb = _reference(x, gso, weight, None)
    assert jnp.allclose(out_nb, ref_nb, atol=3e-2, rtol=3e-2)

    print("KERNEL_OK")
</pallas_src>

<mosaic_0001>
module attributes {stable_mosaic.version = 11 : i64} {
  func.func @_cheb_block_kernel(%arg0: i32, %arg1: memref<16x48xbf16, #tpu.memory_space<vmem>>, %arg2: memref<48x512xbf16, #tpu.memory_space<vmem>>, %arg3: memref<1x512xf32, #tpu.memory_space<vmem>>, %arg4: memref<16x512xf32, #tpu.memory_space<vmem>>) attributes {dimension_semantics = [#tpu.dimension_semantics<parallel>], iteration_bounds = array<i64: 2>, scalar_prefetch = 0 : i64, scratch_operands = 0 : i64, tpu.core_type = #tpu.core_type<tc>, window_params = [{pipeline_mode = #tpu.pipeline_mode<synchronous>, transform_indices = @transform_0, window_bounds = array<i64: 16, 48>}, {transform_indices = @transform_1, window_bounds = array<i64: 48, 512>}, {pipeline_mode = #tpu.pipeline_mode<synchronous>, transform_indices = @transform_2, window_bounds = array<i64: 1, 512>}, {transform_indices = @transform_3, window_bounds = array<i64: 16, 512>}]} {
    %c0 = arith.constant 0 : index
    %c0_0 = arith.constant 0 : index
    %0 = vector.load %arg1[%c0, %c0_0] : memref<16x48xbf16, #tpu.memory_space<vmem>>, vector<16x48xbf16>
    %c0_1 = arith.constant 0 : index
    %c0_2 = arith.constant 0 : index
    %1 = vector.load %arg2[%c0_1, %c0_2] : memref<48x512xbf16, #tpu.memory_space<vmem>>, vector<48x512xbf16>
    %cst = arith.constant dense<0.000000e+00> : vector<16x512xf32>
    %2 = tpu.matmul %0, %1, %cst {dimension_numbers = #tpu.dot_dimension_numbers<[1], [0], [0], [1], [0, 0, 1, 1], [], []>} : vector<16x48xbf16>, vector<48x512xbf16>, vector<16x512xf32> -> vector<16x512xf32>
    %c0_3 = arith.constant 0 : index
    %c0_4 = arith.constant 0 : index
    %3 = vector.load %arg3[%c0_3, %c0_4] : memref<1x512xf32, #tpu.memory_space<vmem>>, vector<1x512xf32>
    %4 = vector.broadcast %3 : vector<1x512xf32> to vector<16x512xf32>
    %5 = arith.addf %2, %4 : vector<16x512xf32>
    %c0_5 = arith.constant 0 : index
    %c0_6 = arith.constant 0 : index
    %6 = vector.load %arg4[%c0_5, %c0_6] : memref<16x512xf32, #tpu.memory_space<vmem>>, vector<16x512xf32>
    tpu.vector_store %arg4[%c0_5, %c0_6], %5 {strides = array<i32>} : memref<16x512xf32, #tpu.memory_space<vmem>>, vector<16x512xf32>,
    return
  }
  func.func @transform_0(%arg0: i32) -> (i32, i32) {
    %c0_i32 = arith.constant 0 : i32
    %c0_i32_0 = arith.constant 0 : i32
    %c0_i32_1 = arith.constant 0 : i32
    return %c0_i32, %c0_i32_0 : i32, i32
  }
  func.func @transform_1(%arg0: i32) -> (i32, i32) {
    %c0_i32 = arith.constant 0 : i32
    %c0_i32_0 = arith.constant 0 : i32
    return %c0_i32, %arg0 : i32, i32
  }
  func.func @transform_2(%arg0: i32) -> (i32, i32) {
    %c0_i32 = arith.constant 0 : i32
    %c0_i32_0 = arith.constant 0 : i32
    %c0_i32_1 = arith.constant 0 : i32
    return %c0_i32, %c0_i32_0 : i32, i32
  }
  func.func @transform_3(%arg0: i32) -> (i32, i32) {
    %c0_i32 = arith.constant 0 : i32
    %c0_i32_0 = arith.constant 0 : i32
    return %c0_i32, %arg0 : i32, i32
  }
}

</mosaic_0001>

<bundles_post_ra>
// kernel: tpu_custom_call.1
= control target key start
LH: loop header
LB: loop body
LE: loop exit
PB: predicated region body
PF: predicated region fallthrough
CT: control target
= control target key end

     0   :  { %8 = vsyncpa [#allocation3], 0  ;;  %s989_s0 = inlined_call_operand.hbm [shape: bf16[16,48], index: 0, kind: input, shape index: {}]   ;;  %s990_s1 = inlined_call_operand.hbm [shape: bf16[48,1024], index: 1, kind: input, shape index: {}]   ;;  %s991_s2 = inlined_call_operand.vmem [shape: f32[1,512], index: 2, kind: input, shape index: {}]   ;;  %s992_s3 = inlined_call_operand.hbm [shape: f32[16,1024], index: 3, kind: output, shape index: {}]  }
   0x1   :  { %9 = vsyncpa [#allocation6], 0 }
   0x2   :  { %11 = vsyncpa [#allocation6 + $0x1], 0 }
   0x3   :  { %12 = vsyncpa [#allocation4], 0 }
   0x4   :  { %14 = vsyncpa [#allocation4 + $0x1], 0  ;;  %s785_s12 = smov 0   ;;  %s787_s13 = smov 0  }
   0x5   :  { %s789_s14 = smov 0   ;;  %s791_s15 = smov 0  }
   0x6 LB: > { %s806_s16 = sadd.s32 4294967295, %s751_s15   ;;  %s505_s17 = sadd.s32 4294967294, %s751_s15   ;;  %s751_s15 = sphi %s791_s15, %s1016_s15   ;;  %s747_s14 = sphi %s789_s14, %s1015_s14   ;;  %s743_s13 = sphi %s787_s13, %s1014_s13   ;;  %s739_s12 = sphi %s785_s12, %s1013_s12  }
   0x7   : > { %s810_s18 = sadd.s32 1, %s751_s15   ;;  %s48_s19 = sadd.s32 1, %s747_s14 }
   0x8   : > { %s45_s20 = ssub.s32 %s751_s15, %s810_s18  ;;  %p55_p0 = scmp.ne.s32.totalorder %s747_s14, %s743_s13 }
   0x9   : > { %p46_p1 = scmp.eq.s32.totalorder %s45_s20, 0  ;;  %p56_p2 = scmp.eq.s32.totalorder %s751_s15, 0 }
   0xa   : > { %p61_p3 = scmp.ne.s32.totalorder %s743_s13, %s739_s12  ;;  %p993_p4 = scmp.eq.s32.totalorder %s806_s16, 0 }
   0xb   : > { %s822_s21 = scalar_select %p46_p1, %s747_s14, %s48_s19  }
   0xc   : > { %p824_p5 = por %p56_p2, %p55_p0  ;;  %p830_p6 = por %p993_p4, %p61_p3 }
   0xd   : > { %p106_p7 = scmp.eq.s32.totalorder %s806_s16, 1  ;;  %p112_p8 = scmp.eq.s32.totalorder %s505_s17, 1 }
   0xe   : > { %s997_s22 = scalar_select %p824_p5, 1, 0 }
   0xf   : > { %s998_s23 = scalar_select %p830_p6, 1, 0 }
  0x10   : > { %p506_p9 = scmp.ge.s32.totalorder %s751_s15, 1  ;;  %p119_p10 = scmp.lt.s32.totalorder %s751_s15, 3 }
  0x11   : > { %p837_p11 = por %p106_p7, %p55_p0  ;;  %p841_p12 = por %p112_p8, %p61_p3 }
  0x12   : > { %p845_p13 = pnand %p506_p9, %p119_p10  ;;  %s753_s27 = smov [#allocation2]  }
  0x13   : > { %s999_s24 = scalar_select %p837_p11, 1, 0 }
  0x14   : > { %s1000_s25 = scalar_select %p841_p12, 1, 0 }
  0x15   : > { %s1001_s26 = scalar_select %p845_p13, 1, 0 }
  0x16   : > { %p546_p1 = pneg %p845_p13  ;;  %s131_s28 = sshll.u32 %s753_s27, 4  ;;  %s132_s28 = int_to_ptr.vmem [resolvable:$true] %s131_s28 }
  0x17   : > { %s148_s30 = sand.u32 1, %s747_s14   ;;  %s623_s6 = scalar_lea.hbm %s989_s0, 128 }
  0x18   : > { %p853_p2 = pnand %p546_p1, %p993_p4  ;;  %p624_p7 = scmp.ne.s32.totalorder %s989_s0, %s623_s6 }
  0x19   : > { %p630_p1 = scmp.lt.u32.totalorder %s623_s6, %s989_s0 }
  0x1a   : > { %p625_p8 = pneg %p853_p2 }
  0x1c   : > { %p626_p9 = pnand %p625_p8, %p624_p7 }
  0x1e   : > { %p627_p10 = pneg %p626_p9 }
  0x20   : > { %p632_p4 = pnand %p630_p1, %p627_p10 }
  0x22   : > { %635 = shalt.err (!%p632_p4)
}
  0x23   : > { %s636_s11 = scalar_lea.vmem %s132_s28, 128  ;;  %p644_p11 = scmp.lt.s32.totalorder %s132_s28, %s132_s28 }
  0x24   : > { %p637_p0 = scmp.ne.s32.totalorder %s132_s28, %s636_s11  ;;  %p645_p6 = scmp.lt.s32.totalorder %s636_s11, %s636_s11 }
  0x26   : > { %p639_p3 = pnand %p637_p0, %p625_p8  ;;  %p646_p13 = por %p645_p6, %p644_p11 }
  0x28   : > { %p640_p12 = pneg %p639_p3 }
  0x2a   : > { %p647_p5 = pnand %p646_p13, %p640_p12 }
  0x2c   : > { %650 = shalt.err (!%p647_p5)
}
  0x2d   : > { %s754_s17 = smov 64   ;;  %s755_s19 = smov 4  }
  0x2e   : > { %549 = dma.hbm_to_vmem [thread:$0]  (!%p853_p2), %s989_s0, 128, %s132_s28, [#allocation3], %s754_s17, %s754_s17, %s755_s19  }
  0x2f   : > { %p1003_p4 = scmp.ne.s32.totalorder %s997_s22, 0  ;;  %p1004_p7 = scmp.lt.s32.totalorder %s751_s15, 2 }
  0x30   : > { %s536_s5 = smul.u32 96, %s148_s30  ;;  %s534_s6 = sshll.u32 %s751_s15, 8 }
  0x31   : > { %p880_p0 = pnand %p1004_p7, %p1003_p4  ;;  %s888_s9 = scalar_lea.hbm %s990_s1, %s534_s6 }
  0x32   : > { %s152_s28 = scalar_lea.vmem [#allocation5], %s536_s5  ;;  %s892_s29 = scalar_lea.sflag [#allocation6], %s148_s30 }
  0x33   : > { %s159_s22 = sshll.u32 %s152_s28, 4  ;;  %s651_s10 = scalar_lea.hbm %s888_s9, 1536  ;;  %s890_s22 = int_to_ptr.vmem [resolvable:$true] %s159_s22 }
  0x34   : > { %p652_p5 = scmp.ne.s32.totalorder %s888_s9, %s651_s10  ;;  %p653_p6 = pneg %p880_p0 }
  0x35   : > { %s656_s19 = scalar_lea.hbm %s990_s1, 3072  ;;  %p657_p13 = scmp.lt.u32.totalorder %s888_s9, %s990_s1 }
  0x36   : > { %p654_p11 = pnand %p653_p6, %p652_p5  ;;  %p658_p2 = scmp.lt.u32.totalorder %s656_s19, %s651_s10 }
  0x37   : > { %p660_p8 = scmp.lt.u32.totalorder %s651_s10, %s888_s9 }
  0x38   : > { %p655_p12 = pneg %p654_p11  ;;  %p659_p3 = por %p658_p2, %p657_p13 }
  0x3a   : > { %p661_p9 = por %p660_p8, %p659_p3 }
  0x3c   : > { %p662_p10 = pnand %p661_p9, %p655_p12 }
  0x3e   : > { %665 = shalt.err (!%p662_p10)
}
  0x3f   : > { %s666_s30 = scalar_lea.vmem %s890_s22, 1536  ;;  %s756_s5 = smov [#allocation5]  }
  0x40   : > { %p667_p1 = scmp.ne.s32.totalorder %s890_s22, %s666_s30  ;;  %s671_s6 = sshll.u32 %s756_s5, 4  ;;  %s672_s6 = int_to_ptr.vmem [resolvable:$false] %s671_s6 }
  0x41   : > { %s673_s7 = scalar_lea.vmem %s672_s6, 3072  ;;  %p674_p5 = scmp.lt.s32.totalorder %s890_s22, %s672_s6 }
  0x42   : > { %p669_p4 = pnand %p667_p1, %p653_p6  ;;  %p675_p11 = scmp.lt.s32.totalorder %s673_s7, %s666_s30 }
  0x44   : > { %p670_p7 = pneg %p669_p4  ;;  %p676_p13 = por %p675_p11, %p674_p5 }
  0x46   : > { %p677_p2 = pnand %p676_p13, %p670_p7 }
  0x48   : > { %680 = shalt.err (!%p677_p2)
}
  0x49   : > { %s757_s8 = smov 512   ;;  %s758_s28 = smov 256  }
  0x4a   : > { %s759_s10 = smov 16   ;;  %p1006_p6 = scmp.ne.s32.totalorder %s1001_s26, 0 }
  0x4b   : > { %553 = dma.hbm_to_vmem [thread:$0]  (!%p880_p0), %s888_s9, 1536, %s890_s22, %s892_s29, %s757_s8, %s758_s28, %s759_s10  }
  0x4c   : > { %171 = sbr.rel (%p1006_p6) target bundleno = 336 (0x150), region = 32  ;;  %p1007_p12 = scmp.eq.s32.totalorder (!%p1006_p6), %s806_s16, 0 }
  0x53   : > { %726 = dma.done.wait (%p1007_p12), [#allocation3], 128   ;;  %p1008_p3 = pmov %p1007_p12 }
  0x54   : > { %s927_s11 = sand.u32 1, %s743_s13   ;;  %p1009_p8 = scmp.ne.s32.totalorder %s998_s23, 0 }
  0x55   : > { %728 = vsyncadd (%p1008_p3), [#allocation3], 4294967168  ;;  %s537_s17 = smul.u32 96, %s927_s11  ;;  %s178_s19 = scalar_lea.sflag [#allocation6], %s927_s11 }
  0x57   : > { %s181_s20 = scalar_lea.vmem [#allocation5], %s537_s17 }
  0x58   : > { %730 = dma.done.wait (%p1009_p8), %s178_s19, 1536  }
  0x59   : > { %732 = vsyncadd (%p1009_p8), %s178_s19, 4294965760  ;;  %v760_v0 = vmov 0   ;;  %v604_v1 = vld [vmem:[%s181_s20 + $0x4] ss:$16 sps:$4 sm:$0xff]   ;;  %v606_v2 = vld [vmem:[%s181_s20 + $0xc] ss:$16 sps:$4 sm:$0xff]   ;;  %v223_v14 = vlaneseq }
  0x5a   : > { %344 = vmatprep.mubr.bf16.mxu0 %v760_v0  ;;  %387 = vmatprep.mubr.bf16.mxu1 %v760_v0  ;;  %v608_v3 = vld [vmem:[%s181_s20] ss:$16 sps:$4 sm:$0xff]   ;;  %v609_v4 = vld [vmem:[%s181_s20 + $0x8] ss:$16 sps:$4 sm:$0xff]   ;;  %v610_v5 = vld [vmem:[%s181_s20 + $0x24] ss:$16 sps:$4 sm:$0xff]  }
  0x5b   : > { %312 = vmatprep.subr.bf16.mxu0 %v604_v1  ;;  %355 = vmatprep.subr.bf16.mxu1 %v606_v2  ;;  %v612_v6 = vld [vmem:[%s181_s20 + $0x2c] ss:$16 sps:$4 sm:$0xff]   ;;  %v614_v7 = vld [vmem:[%s181_s20 + $0x20] ss:$16 sps:$4 sm:$0xff]   ;;  %v615_v8 = vld [vmem:[%s181_s20 + $0x28] ss:$16 sps:$4 sm:$0xff]  }
  0x5c   : > { %313 = vmatpush1.bf16.msra.mxu0 %v608_v3  ;;  %356 = vmatpush1.bf16.msra.mxu1 %v609_v4  ;;  %v616_v9 = vld [vmem:[%s181_s20 + $0x44] ss:$16 sps:$4 sm:$0xff]   ;;  %v618_v10 = vld [vmem:[%s181_s20 + $0x4c] ss:$16 sps:$4 sm:$0xff]   ;;  %v620_v11 = vld [vmem:[%s181_s20 + $0x40] ss:$16 sps:$4 sm:$0xff]  }
  0x5d   : > { %314 = vmatprep.subr.bf16.mxu0 %v610_v5  ;;  %357 = vmatprep.subr.bf16.mxu1 %v612_v6  ;;  %v621_v12 = vld [vmem:[%s181_s20 + $0x48] ss:$16 sps:$4 sm:$0xff]   ;;  %vm308_vm0 = vcmask 392192   ;;  %v224_v15 = vshrl.u32 %v223_v14, 7  ;;  %s513_s4 = sshll.u32 %s927_s11, 6  ;;  %s535_s29 = sshll.u32 %s806_s16, 9 }
  0x5e   : > { %v622_v13 = vld [vmem:[#allocation2] sm:$0xff]   ;;  %s203_s9 = scalar_lea.vmem [#allocation7], %s513_s4  ;;  %s945_s30 = scalar_lea.hbm %s992_s3, %s535_s29 }
  0x5f   : > { %v225_v16 = vsub.s32 0, %v224_v15  ;;  %v233_v17 = vsub.s32 2, %v224_v15  ;;  %v221_v18 = vld [vmem:[%s991_s2] sm:$0xf]  ;;  %v229_v19 = vsub.s32 1, %v224_v15  ;;  %v237_v20 = vsub.s32 3, %v224_v15 }
  0x60   : > { %315 = vmatpush1.bf16.msra.mxu0 %v614_v7  ;;  %358 = vmatpush1.bf16.msra.mxu1 %v615_v8  ;;  %s420_s22 = sshll.u32 %s203_s9, 4  ;;  %s407_s5 = scalar_lea.sflag [#allocation4], %s927_s11  ;;  %s940_s22 = int_to_ptr.vmem [resolvable:$true] %s420_s22 }
  0x61   : > { %316 = vmatprep.subr.bf16.mxu0 %v616_v9  ;;  %359 = vmatprep.subr.bf16.mxu1 %v618_v10  ;;  %v226_v21 = vrot.slane %v221_v18, %v225_v16  ;;  %v234_v22 = vrot.slane %v221_v18, %v233_v17  ;;  %v230_v23 = vrot.slane %v221_v18, %v229_v19  ;;  %s681_s6 = scalar_lea.vmem %s940_s22, 1024  ;;  %p1010_p9 = scmp.ne.s32.totalorder %s999_s24, 0 }
  0x62   : > { %v238_v24 = vrot.slane %v221_v18, %v237_v20  ;;  %p682_p0 = scmp.ne.s32.totalorder %s940_s22, %s681_s6  ;;  %s761_s7 = smov [#allocation7]  }
  0x63   : > { %s685_s8 = sshll.u32 %s761_s7, 4  ;;  %s686_s8 = int_to_ptr.vmem [resolvable:$false] %s685_s8 }
  0x64   : > { %317 = vmatpush1.bf16.msra.mxu0 %v620_v11  ;;  %360 = vmatpush1.bf16.msra.mxu1 %v621_v12  ;;  %p683_p10 = pnand %p682_p0, %p1010_p9  ;;  %s687_s28 = scalar_lea.vmem %s686_s8, 2048 }
  0x65   : > { %p688_p4 = scmp.lt.s32.totalorder %s940_s22, %s686_s8  ;;  %p689_p7 = scmp.lt.s32.totalorder %s687_s28, %s681_s6 }
  0x66   : > { %p684_p1 = pneg %p683_p10 }
  0x67   : > { %527 = vmatmul.mubr.msk.bf16.vlgmr.msra.gmra.mrb[0].mxu0 %vm308_vm0, %v622_v13  ;;  %528 = vmatmul.mubr.msk.bf16.vlgmr.msra.gmra.mrb[0].mxu1 %vm308_vm0, %v622_v13  ;;  %p690_p5 = por %p689_p7, %p688_p4 }
  0x69   : > { %p691_p11 = pnand %p690_p5, %p684_p1 }
 0x13a   : > { %v346_v25 = vpop.f32.mrb[0].mxu0  ;;  %v389_v26 = vpop.f32.mrb[0].mxu1 }
 0x13b   : > { %v347_v27 = vadd.f32 %v346_v25, %v226_v21  ;;  %v390_v28 = vadd.f32 %v389_v26, %v234_v22  ;;  %v348_v29 = vpop.f32.mrb[1].mxu0  ;;  %v391_v30 = vpop.f32.mrb[1].mxu1 }
 0x13c   : > { %v349_v31 = vadd.f32 %v348_v29, %v230_v23  ;;  %v392_v32 = vadd.f32 %v391_v30, %v238_v24  ;;  %v350_v33 = vpop.f32.mrb[2].mxu0  ;;  %v393_v34 = vpop.f32.mrb[2].mxu1 }
 0x13d   : > { %398 = vst [vmem:[%s203_s9] sm:$0xff] %v347_v27  ;;  %400 = vst [vmem:[%s203_s9 + $0x10] sm:$0xff] %v390_v28  ;;  %v351_v35 = vadd.f32 %v350_v33, %v226_v21  ;;  %v394_v36 = vadd.f32 %v393_v34, %v234_v22  ;;  %v352_v37 = vpop.f32.mrb[3].mxu0  ;;  %v395_v38 = vpop.f32.mrb[3].mxu1 }
 0x13e   : > { %399 = vst [vmem:[%s203_s9 + $0x8] sm:$0xff] %v349_v31  ;;  %401 = vst [vmem:[%s203_s9 + $0x18] sm:$0xff] %v392_v32  ;;  %v353_v39 = vadd.f32 %v352_v37, %v230_v23  ;;  %v396_v40 = vadd.f32 %v395_v38, %v238_v24 }
 0x13f   : > { %402 = vst [vmem:[%s203_s9 + $0x20] sm:$0xff] %v351_v35  ;;  %404 = vst [vmem:[%s203_s9 + $0x30] sm:$0xff] %v394_v36 }
 0x140   : > { %403 = vst [vmem:[%s203_s9 + $0x28] sm:$0xff] %v353_v39  ;;  %405 = vst [vmem:[%s203_s9 + $0x38] sm:$0xff] %v396_v40 }
 0x141   : > { %694 = shalt.err (!%p691_p11)
}
 0x142   : > { %s695_s10 = scalar_lea.hbm %s945_s30, 1024  ;;  %s699_s20 = scalar_lea.hbm %s992_s3, 2048 }
 0x143   : > { %p696_p13 = scmp.ne.s32.totalorder %s945_s30, %s695_s10  ;;  %p700_p12 = scmp.lt.u32.totalorder %s945_s30, %s992_s3 }
 0x144   : > { %p701_p3 = scmp.lt.u32.totalorder %s699_s20, %s695_s10  ;;  %p703_p0 = scmp.lt.u32.totalorder %s695_s10, %s945_s30 }
 0x145   : > { %p697_p2 = pnand %p696_p13, %p1010_p9 }
 0x146   : > { %p702_p8 = por %p701_p3, %p700_p12 }
 0x147   : > { %p698_p6 = pneg %p697_p2 }
 0x148   : > { %p704_p10 = por %p703_p0, %p702_p8 }
 0x14a   : > { %p705_p1 = pnand %p704_p10, %p698_p6 }
 0x14c   : > { %708 = shalt.err (!%p705_p1)
}
 0x14d   : > { %s762_s4 = smov 512   ;;  %s763_s9 = smov 1024  }
 0x14e   : > { %s764_s29 = smov 32  }
 0x14f   : > { %544 = dma.vmem_to_hbm [thread:$0]  (%p1010_p9), %s940_s22, 1024, %s945_s30, %s407_s5, %s762_s4, %s763_s9, %s764_s29  }
 0x150 PF: > { %s435_s16 = sand.u32 1, %s739_s12   ;;  %p1011_p4 = scmp.ne.s32.totalorder %s1000_s25, 0 }
 0x151   : > { %p1012_p7 = scmp.ge.s32.totalorder %s751_s15, 2  ;;  %s436_s27 = scalar_lea.sflag [#allocation4], %s435_s16 }
 0x153   : > { %p555_p5 = pnand %p1012_p7, %p1011_p4 }
 0x155   : > { %734 = dma.done.wait (!%p555_p5), %s436_s27, 1024  }
 0x156   : > { %736 = vsyncadd (!%p555_p5), %s436_s27, 4294966272  ;;  %p17_p11 = scmp.ge.s32.totalorder %s810_s18, 4   ;;  %s1013_s12 = smov %s743_s13 }
 0x157   : > { %s1014_s13 = smov %s747_s14  ;;  %s1015_s14 = smov %s822_s21 }
 0x158   : > { %s1016_s15 = smov %s810_s18  ;;  %19 = sbr.rel (!%p17_p11) target bundleno = 6 (0x6), region = 82 }
 0x15f   :  { %441 = vsyncpa [#allocation3], 1 }
 0x160   :  { %443 = vsyncpa [#allocation3 + $0x1], 1 }
 0x161   :  { %444 = vsyncpa [#allocation6], 1 }
 0x162   :  { %446 = vsyncpa [#allocation6 + $0x1], 1 }
 0x163   :  { %447 = vsyncpa [#allocation4], 1 }
 0x164   :  { %449 = vsyncpa [#allocation4 + $0x1], 1 }

</bundles_post_ra>
